<compile_context>
chip_gen: v7x
topology: tpu7x:2x2x1
jax: 0.10.0
libtpu: 0.0.40
codegen_flags: <defaults>
</compile_context>

<pallas_src>
import functools

import jax
import jax.numpy as jnp
from jax.experimental import pallas as pl
from jax.experimental.pallas import tpu as pltpu


def _pe_add_kernel(x_ref, pe_ref, o_ref, *, batch: int):
    # x_ref : (tile_s, B*D)   lane-dense activation slab
    # pe_ref: (tile_s, D)     positional-encoding rows for this sequence tile
    # o_ref : (tile_s, B*D)
    pe = pe_ref[...]
    # Replicate pe across the batch along the lane axis: each D-wide chunk of a
    # row of x gets the same pe row (lane-aligned vreg copies on the VPU).
    pe_b = jnp.tile(pe, (1, batch))                       # (tile_s, B*D)
    o_ref[...] = (x_ref[...] + pe_b).astype(o_ref.dtype)


def make_pe_table(d_model: int, max_len: int = 5000,
                  dtype=jnp.float32) -> jnp.ndarray:
    """Deterministic sinusoidal table, identical to the PyTorch __init__.

    Even columns = sin, odd columns = cos.  Handles odd d_model by building the
    interleaved table and slicing to d_model columns.
    """
    position = jnp.arange(max_len, dtype=jnp.float32)[:, None]           # (L, 1)
    div_term = jnp.exp(
        jnp.arange(0, d_model, 2, dtype=jnp.float32)
        * (-jnp.log(jnp.float32(10000.0)) / d_model)
    )                                                                     # (ceil(D/2),)
    half = div_term.shape[0]
    angles = position * div_term                                          # (L, ceil(D/2))
    pe = jnp.stack([jnp.sin(angles), jnp.cos(angles)], axis=-1)           # (L, ceil(D/2), 2)
    pe = pe.reshape(max_len, 2 * half)[:, :d_model]                       # (L, D)
    return pe.astype(dtype)


def positional_encoding_forward(x: jnp.ndarray, pe: jnp.ndarray,
                                dropout_p: float = 0.1,
                                training: bool = False,
                                tile_s: int | None = None) -> jnp.ndarray:
    """x: (S, B, D).  Returns x + pe[:S] broadcast over batch (eval-mode dropout)."""
    S, B, D = x.shape
    L, Dp = pe.shape
    assert Dp == D and S <= L, "pe table does not cover this input"

    # Free contiguous reshape to a lane-dense 2D slab.
    x2d = x.reshape(S, B * D)
    itemsize = x.dtype.itemsize

    if S < 8:
        # Tiny sequence: a single block equal to the full array dims (satisfies
        # the (8,128) rule via the 'full dim' escape hatch).  Slice pe so its
        # block is also full-extent.
        pe_in = pe[:S]
        tile_s = S
    else:
        pe_in = pe
        if tile_s is None:
            # Target ~2 MiB activation blocks (mem-bound sweet spot), multiple of 8.
            target_bytes = 2 << 20
            tile_s = target_bytes // max(1, B * D * itemsize)
        tile_s = max(8, (min(int(tile_s), S) // 8) * 8)

    grid = (pl.cdiv(S, tile_s),)

    # VMEM budget: double-buffered x block + out block + pe block, 2x headroom,
    # clamped to a range safe on all generations (v7x physical VMEM is 64 MiB).
    block_bytes = tile_s * B * D * itemsize
    pe_block_bytes = tile_s * D * pe_in.dtype.itemsize
    vmem_needed = 2 * (2 * block_bytes + pe_block_bytes)
    vmem_limit = int(min(max(2 * vmem_needed, 16 << 20), 48 << 20))

    out2d = pl.pallas_call(
        functools.partial(_pe_add_kernel, batch=B),
        out_shape=jax.ShapeDtypeStruct((S, B * D), x.dtype),
        grid=grid,
        in_specs=[
            pl.BlockSpec((tile_s, B * D), lambda i: (i, 0)),  # x slab tile
            pl.BlockSpec((tile_s, D), lambda i: (i, 0)),      # pe rows for tile
        ],
        out_specs=pl.BlockSpec((tile_s, B * D), lambda i: (i, 0)),
        compiler_params=pltpu.CompilerParams(
            dimension_semantics=("parallel",),   # megacore-shardable on v7x
            vmem_limit_bytes=vmem_limit,
        ),
        # NOTE: input_output_aliases={0: 0} would make this in-place and halve
        # HBM footprint when the caller donates x; left off to keep the wrapper
        # safe in eager (non-donating) use.
    )(x2d, pe_in)

    # Eval-mode dropout == identity (see TODO above for training mode).
    del dropout_p, training
    return out2d.reshape(S, B, D)


if __name__ == "__main__":
    # Small but lane-dense shapes consistent with the module's forward:
    # (seq, batch, d_model) with d_model a multiple of 128.
    S, B, D = 16, 4, 128
    max_len = 5000  # module default

    key = jax.random.PRNGKey(0)
    x = jax.random.normal(key, (S, B, D), dtype=jnp.float32)

    pe = make_pe_table(D, max_len)

    # tile_s=8 -> 2 grid steps, exercising the pipelined path.
    y = positional_encoding_forward(x, pe, dropout_p=0.1, training=False, tile_s=8)
    y = jax.block_until_ready(y)

    # Reference check in plain JAX (eval-mode forward).
    y_ref = x + pe[:S, None, :]
    assert y.shape == (S, B, D)
    assert jnp.allclose(y, y_ref, atol=1e-6, rtol=1e-6), "mismatch vs reference"

    print("KERNEL_OK")
</pallas_src>

<mosaic_0001>
module attributes {stable_mosaic.version = 11 : i64} {
  func.func @_pe_add_kernel(%arg0: i32, %arg1: memref<8x512xf32, #tpu.memory_space<vmem>>, %arg2: memref<8x128xf32, #tpu.memory_space<vmem>>, %arg3: memref<8x512xf32, #tpu.memory_space<vmem>>) attributes {dimension_semantics = [#tpu.dimension_semantics<parallel>], iteration_bounds = array<i64: 2>, scalar_prefetch = 0 : i64, scratch_operands = 0 : i64, tpu.core_type = #tpu.core_type<tc>, window_params = [{transform_indices = @transform_0, window_bounds = array<i64: 8, 512>}, {transform_indices = @transform_1, window_bounds = array<i64: 8, 128>}, {transform_indices = @transform_2, window_bounds = array<i64: 8, 512>}]} {
    %c0 = arith.constant 0 : index
    %c0_0 = arith.constant 0 : index
    %0 = vector.load %arg2[%c0, %c0_0] : memref<8x128xf32, #tpu.memory_space<vmem>>, vector<8x128xf32>
    %1 = tpu.concatenate %0, %0, %0, %0 in 1 : vector<8x128xf32>, vector<8x128xf32>, vector<8x128xf32>, vector<8x128xf32> -> vector<8x512xf32>
    %c0_1 = arith.constant 0 : index
    %c0_2 = arith.constant 0 : index
    %2 = vector.load %arg1[%c0_1, %c0_2] : memref<8x512xf32, #tpu.memory_space<vmem>>, vector<8x512xf32>
    %3 = arith.addf %2, %1 : vector<8x512xf32>
    %c0_3 = arith.constant 0 : index
    %c0_4 = arith.constant 0 : index
    %4 = vector.load %arg3[%c0_3, %c0_4] : memref<8x512xf32, #tpu.memory_space<vmem>>, vector<8x512xf32>
    tpu.vector_store %arg3[%c0_3, %c0_4], %3 {strides = array<i32>} : memref<8x512xf32, #tpu.memory_space<vmem>>, vector<8x512xf32>,
    return
  }
  func.func @transform_0(%arg0: i32) -> (i32, i32) {
    %c0_i32 = arith.constant 0 : i32
    %c0_i32_0 = arith.constant 0 : i32
    return %arg0, %c0_i32 : i32, i32
  }
  func.func @transform_1(%arg0: i32) -> (i32, i32) {
    %c0_i32 = arith.constant 0 : i32
    %c0_i32_0 = arith.constant 0 : i32
    return %arg0, %c0_i32 : i32, i32
  }
  func.func @transform_2(%arg0: i32) -> (i32, i32) {
    %c0_i32 = arith.constant 0 : i32
    %c0_i32_0 = arith.constant 0 : i32
    return %arg0, %c0_i32 : i32, i32
  }
}

</mosaic_0001>

<bundles_post_ra>
// kernel: tpu_custom_call.1
= control target key start
LH: loop header
LB: loop body
LE: loop exit
PB: predicated region body
PF: predicated region fallthrough
CT: control target
= control target key end

     0   :  { %7 = vsyncpa [#allocation3], 0  ;;  %s742_s0 = inlined_call_operand.hbm [shape: f32[16,512], index: 0, kind: input, shape index: {}]   ;;  %s743_s1 = inlined_call_operand.hbm [shape: f32[5000,128], index: 1, kind: input, shape index: {}]   ;;  %s744_s2 = inlined_call_operand.hbm [shape: f32[16,512], index: 2, kind: output, shape index: {}]  }
   0x1   :  { %9 = vsyncpa [#allocation3 + $0x1], 0 }
   0x2   :  { %10 = vsyncpa [#allocation6], 0 }
   0x3   :  { %12 = vsyncpa [#allocation6 + $0x1], 0 }
   0x4   :  { %13 = vsyncpa [#allocation4], 0 }
   0x5   :  { %15 = vsyncpa [#allocation4 + $0x1], 0  ;;  %s538_s9 = smov 0   ;;  %s540_s10 = smov 0  }
   0x6   :  { %s542_s11 = smov 0   ;;  %s544_s12 = smov 0  }
   0x7 LB: > { %s559_s13 = sadd.s32 4294967295, %s518_s12   ;;  %s318_s14 = sadd.s32 4294967294, %s518_s12   ;;  %s518_s12 = sphi %s544_s12, %s763_s12   ;;  %s514_s11 = sphi %s542_s11, %s762_s11   ;;  %s510_s10 = sphi %s540_s10, %s761_s10   ;;  %s506_s9 = sphi %s538_s9, %s760_s9  }
   0x8   : > { %s563_s15 = sadd.s32 1, %s518_s12   ;;  %s28_s16 = sadd.s32 1, %s514_s11 }
   0x9   : > { %s25_s17 = ssub.s32 %s518_s12, %s563_s15  ;;  %p35_p0 = scmp.ne.s32.totalorder %s514_s11, %s510_s10 }
   0xa   : > { %p26_p1 = scmp.eq.s32.totalorder %s25_s17, 0  ;;  %p36_p2 = scmp.eq.s32.totalorder %s518_s12, 0 }
   0xb   : > { %p41_p3 = scmp.ne.s32.totalorder %s510_s10, %s506_s9  ;;  %p42_p4 = scmp.eq.s32.totalorder %s559_s13, 0 }
   0xc   : > { %s575_s18 = scalar_select %p26_p1, %s514_s11, %s28_s16  }
   0xd   : > { %p577_p5 = por %p36_p2, %p35_p0  ;;  %p581_p6 = por %p42_p4, %p41_p3 }
   0xe   : > { %p91_p7 = scmp.eq.s32.totalorder %s559_s13, 1  ;;  %p97_p8 = scmp.eq.s32.totalorder %s318_s14, 1 }
   0xf   : > { %s748_s20 = scalar_select %p581_p6, 1, 0 }
  0x10   : > { %p354_p10 = scmp.lt.s32.totalorder %s518_s12, 2  ;;  %p588_p11 = por %p91_p7, %p35_p0 }
  0x11   : > { %p592_p12 = por %p97_p8, %p41_p3  ;;  %s597_s23 = sand.u32 1, %s514_s11  }
  0x12   : > { %s749_s21 = scalar_select %p588_p11, 1, 0 }
  0x13   : > { %s750_s22 = scalar_select %p592_p12, 1, 0 }
  0x14   : > { %s335_s24 = sshll.u32 %s518_s12, 9  ;;  %s321_s25 = sshll.u32 %s597_s23, 5 }
  0x15   : > { %s604_s28 = scalar_lea.hbm %s742_s0, %s335_s24  ;;  %s121_s29 = scalar_lea.vmem [#allocation2], %s321_s25 }
  0x16   : > { %s129_s30 = sshll.u32 %s121_s29, 4  ;;  %p608_p13 = pnand %p354_p10, %p577_p5  ;;  %s612_s30 = int_to_ptr.vmem [resolvable:$true] %s129_s30 }
  0x17   : > { %s118_s4 = scalar_lea.sflag [#allocation3], %s597_s23  ;;  %s388_s5 = scalar_lea.hbm %s604_s28, 512 }
  0x18   : > { %p389_p2 = scmp.ne.s32.totalorder %s604_s28, %s388_s5  ;;  %p390_p3 = pneg %p608_p13 }
  0x19   : > { %s393_s8 = scalar_lea.hbm %s742_s0, 1024  ;;  %p394_p5 = scmp.lt.u32.totalorder %s604_s28, %s742_s0 }
  0x1a   : > { %p391_p4 = pnand %p390_p3, %p389_p2  ;;  %p395_p8 = scmp.lt.u32.totalorder %s393_s8, %s388_s5 }
  0x1b   : > { %p397_p9 = scmp.lt.u32.totalorder %s388_s5, %s604_s28 }
  0x1c   : > { %p392_p7 = pneg %p391_p4  ;;  %p396_p10 = por %p395_p8, %p394_p5 }
  0x1e   : > { %p398_p0 = por %p397_p9, %p396_p10 }
  0x20   : > { %p399_p1 = pnand %p398_p0, %p392_p7 }
  0x22   : > { %402 = shalt.err (!%p399_p1)
}
  0x23   : > { %s403_s17 = scalar_lea.vmem %s612_s30, 512  ;;  %s520_s19 = smov [#allocation2]  }
  0x24   : > { %p404_p2 = scmp.ne.s32.totalorder %s612_s30, %s403_s17  ;;  %s408_s24 = sshll.u32 %s520_s19, 4  ;;  %s409_s24 = int_to_ptr.vmem [resolvable:$false] %s408_s24 }
  0x25   : > { %s410_s25 = scalar_lea.vmem %s409_s24, 1024  ;;  %p411_p11 = scmp.lt.s32.totalorder %s612_s30, %s409_s24 }
  0x26   : > { %p406_p4 = pnand %p404_p2, %p390_p3  ;;  %p412_p5 = scmp.lt.s32.totalorder %s410_s25, %s403_s17 }
  0x28   : > { %p407_p12 = pneg %p406_p4  ;;  %p413_p8 = por %p412_p5, %p411_p11 }
  0x2a   : > { %p414_p9 = pnand %p413_p8, %p407_p12 }
  0x2c   : > { %417 = shalt.err (!%p414_p9)
}
  0x2d   : > { %346 = dma.hbm_to_vmem [thread:$0]  (!%p608_p13), %s604_s28, 512, %s612_s30, %s118_s4  }
  0x2e   : > { %p752_p0 = scmp.lt.s32.totalorder %s518_s12, 3  ;;  %p753_p1 = scmp.ge.s32.totalorder %s518_s12, 1 }
  0x2f   : > { %s324_s27 = sshll.u32 %s597_s23, 3  ;;  %s325_s29 = sshll.u32 %s518_s12, 7 }
  0x30   : > { %p646_p7 = pnand %p753_p1, %p752_p0  ;;  %s655_s7 = scalar_lea.hbm %s743_s1, %s325_s29 }
  0x31   : > { %s140_s8 = scalar_lea.vmem [#allocation5], %s324_s27  ;;  %s137_s28 = scalar_lea.sflag [#allocation6], %s597_s23 }
  0x32   : > { %s754_s26 = scalar_select %p646_p7, 1, 0 }
  0x33   : > { %s147_s14 = sshll.u32 %s140_s8, 4  ;;  %s418_s30 = scalar_lea.hbm %s655_s7, 128  ;;  %s148_s14 = int_to_ptr.vmem [resolvable:$true] %s147_s14 }
  0x34   : > { %p419_p11 = scmp.ne.s32.totalorder %s655_s7, %s418_s30  ;;  %s423_s17 = scalar_lea.hbm %s743_s1, 80000 }
  0x35   : > { %p424_p2 = scmp.lt.u32.totalorder %s655_s7, %s743_s1  ;;  %p425_p4 = scmp.lt.u32.totalorder %s423_s17, %s418_s30 }
  0x36   : > { %p421_p12 = pnand %p419_p11, %p390_p3  ;;  %p427_p8 = scmp.lt.u32.totalorder %s418_s30, %s655_s7 }
  0x37   : > { %p426_p5 = por %p425_p4, %p424_p2 }
  0x38   : > { %p422_p10 = pneg %p421_p12 }
  0x39   : > { %p428_p9 = por %p427_p8, %p426_p5 }
  0x3b   : > { %p429_p0 = pnand %p428_p9, %p422_p10 }
  0x3d   : > { %432 = shalt.err (!%p429_p0)
}
  0x3e   : > { %s433_s23 = scalar_lea.vmem %s148_s14, 128  ;;  %s521_s25 = smov [#allocation5]  }
  0x3f   : > { %p434_p1 = scmp.ne.s32.totalorder %s148_s14, %s433_s23  ;;  %s438_s27 = sshll.u32 %s521_s25, 4  ;;  %s439_s27 = int_to_ptr.vmem [resolvable:$false] %s438_s27 }
  0x40   : > { %s440_s29 = scalar_lea.vmem %s439_s27, 256  ;;  %p441_p6 = scmp.lt.s32.totalorder %s148_s14, %s439_s27 }
  0x41   : > { %p436_p11 = pnand %p434_p1, %p390_p3  ;;  %p442_p7 = scmp.lt.s32.totalorder %s440_s29, %s433_s23 }
  0x43   : > { %p437_p12 = pneg %p436_p11  ;;  %p443_p2 = por %p442_p7, %p441_p6 }
  0x45   : > { %p444_p4 = pnand %p443_p2, %p437_p12 }
  0x47   : > { %447 = shalt.err (!%p444_p4)
}
  0x48   : > { %349 = dma.hbm_to_vmem [thread:$0]  (!%p608_p13), %s655_s7, 128, %s148_s14, %s137_s28  }
  0x49   : > { %p755_p10 = scmp.ne.s32.totalorder %s754_s26, 0 }
  0x4a   : > { %s680_s5 = sand.u32 (!%p755_p10), 1, %s510_s10   ;;  %p756_p3 = scmp.ne.s32.totalorder (!%p755_p10), %s748_s20, 0 }
  0x4b   : > { %156 = sbr.rel (%p755_p10) target bundleno = 112 (0x70), region = 28  ;;  %s327_s6 = sshll.u32 (!%p755_p10), %s680_s5, 5 }
  0x4c   : > { %s159_s8 = scalar_lea.sflag (!%p755_p10), [#allocation3], %s680_s5  ;;  %s162_s30 = scalar_lea.vmem (!%p755_p10), [#allocation2], %s327_s6 }
  0x52   : > { %493 = dma.done.wait (%p756_p3), %s159_s8, 512  }
  0x53   : > { %495 = vsyncadd (%p756_p3), %s159_s8, 4294966784  ;;  %s328_s3 = sshll.u32 %s680_s5, 3  ;;  %s168_s26 = scalar_lea.sflag [#allocation6], %s680_s5 }
  0x54   : > { %s171_s7 = scalar_lea.vmem [#allocation5], %s328_s3 }
  0x55   : > { %497 = dma.done.wait (%p756_p3), %s168_s26, 128  }
  0x56   : > { %499 = vsyncadd (%p756_p3), %s168_s26, 4294967168  ;;  %s196_s14 = scalar_lea.vmem [#allocation7], %s327_s6  ;;  %s336_s4 = sshll.u32 %s559_s13, 9  ;;  %v197_v0 = vld [vmem:[%s171_s7] sm:$0xff]  ;;  %v200_v5 = vld [vmem:[%s162_s30 + $0x10] sm:$0xff] }
  0x57   : > { %s225_s28 = sshll.u32 %s196_s14, 4  ;;  %v198_v1 = vld [vmem:[%s162_s30] sm:$0xff]  ;;  %v199_v2 = vld [vmem:[%s162_s30 + $0x8] sm:$0xff]  ;;  %v201_v6 = vld [vmem:[%s162_s30 + $0x18] sm:$0xff]  ;;  %v204_v7 = vadd.f32 %v200_v5, %v197_v0  ;;  %s700_s13 = scalar_lea.hbm %s744_s2, %s336_s4  ;;  %s695_s28 = int_to_ptr.vmem [resolvable:$true] %s225_s28 }
  0x58   : > { %v202_v3 = vadd.f32 %v198_v1, %v197_v0  ;;  %v203_v4 = vadd.f32 %v199_v2, %v197_v0  ;;  %v205_v8 = vadd.f32 %v201_v6, %v197_v0  ;;  %s211_s17 = scalar_lea.sflag [#allocation4], %s680_s5  ;;  %s448_s19 = scalar_lea.vmem %s695_s28, 512 }
  0x59   : > { %208 = vst [vmem:[%s196_s14 + $0x10] sm:$0xff] %v204_v7  ;;  %p449_p6 = scmp.ne.s32.totalorder %s695_s28, %s448_s19  ;;  %p757_p13 = scmp.ne.s32.totalorder %s749_s21, 0 }
  0x5a   : > { %206 = vst [vmem:[%s196_s14] sm:$0xff] %v202_v3  ;;  %207 = vst [vmem:[%s196_s14 + $0x8] sm:$0xff] %v203_v4  ;;  %s522_s24 = smov [#allocation7]  }
  0x5b   : > { %209 = vst [vmem:[%s196_s14 + $0x18] sm:$0xff] %v205_v8  ;;  %p450_p7 = pnand %p449_p6, %p757_p13  ;;  %s452_s23 = sshll.u32 %s522_s24, 4  ;;  %s453_s23 = int_to_ptr.vmem [resolvable:$false] %s452_s23 }
  0x5c   : > { %s454_s25 = scalar_lea.vmem %s453_s23, 1024  ;;  %p455_p8 = scmp.lt.s32.totalorder %s695_s28, %s453_s23 }
  0x5d   : > { %p451_p5 = pneg %p450_p7  ;;  %p456_p9 = scmp.lt.s32.totalorder %s454_s25, %s448_s19 }
  0x5f   : > { %p457_p0 = por %p456_p9, %p455_p8 }
  0x61   : > { %p458_p1 = pnand %p457_p0, %p451_p5 }
  0x63   : > { %461 = shalt.err (!%p458_p1)
}
  0x64   : > { %s462_s27 = scalar_lea.hbm %s700_s13, 512  ;;  %s466_s6 = scalar_lea.hbm %s744_s2, 1024 }
  0x65   : > { %p463_p11 = scmp.ne.s32.totalorder %s700_s13, %s462_s27  ;;  %p467_p4 = scmp.lt.u32.totalorder %s700_s13, %s744_s2 }
  0x66   : > { %p468_p10 = scmp.lt.u32.totalorder %s466_s6, %s462_s27  ;;  %p470_p6 = scmp.lt.u32.totalorder %s462_s27, %s700_s13 }
  0x67   : > { %p464_p12 = pnand %p463_p11, %p757_p13 }
  0x68   : > { %p469_p3 = por %p468_p10, %p467_p4 }
  0x69   : > { %p465_p2 = pneg %p464_p12 }
  0x6a   : > { %p471_p7 = por %p470_p6, %p469_p3 }
  0x6c   : > { %p472_p5 = pnand %p471_p7, %p465_p2 }
  0x6e   : > { %475 = shalt.err (!%p472_p5)
}
  0x6f   : > { %341 = dma.vmem_to_hbm [thread:$0]  (%p757_p13), %s695_s28, 512, %s700_s13, %s211_s17  }
  0x70 PF: > { %s237_s3 = sand.u32 1, %s506_s9   ;;  %p758_p8 = scmp.ne.s32.totalorder %s750_s22, 0 }
  0x71   : > { %p759_p9 = scmp.ge.s32.totalorder %s518_s12, 2  ;;  %s238_s26 = scalar_lea.sflag [#allocation4], %s237_s3 }
  0x73   : > { %p351_p0 = pnand %p759_p9, %p758_p8 }
  0x75   : > { %501 = dma.done.wait (!%p351_p0), %s238_s26, 512  }
  0x76   : > { %503 = vsyncadd (!%p351_p0), %s238_s26, 4294966784  ;;  %p18_p1 = scmp.ge.s32.totalorder %s563_s15, 4   ;;  %s760_s9 = smov %s510_s10 }
  0x77   : > { %s761_s10 = smov %s514_s11  ;;  %s762_s11 = smov %s575_s18 }
  0x78   : > { %s763_s12 = smov %s563_s15  ;;  %20 = sbr.rel (!%p18_p1) target bundleno = 7 (0x7), region = 86 }
  0x7f   :  { %243 = vsyncpa [#allocation3], 1 }
  0x80   :  { %245 = vsyncpa [#allocation3 + $0x1], 1 }
  0x81   :  { %246 = vsyncpa [#allocation6], 1 }
  0x82   :  { %248 = vsyncpa [#allocation6 + $0x1], 1 }
  0x83   :  { %249 = vsyncpa [#allocation4], 1 }
  0x84   :  { %251 = vsyncpa [#allocation4 + $0x1], 1 }

</bundles_post_ra>
